<compile_context>
chip_gen: v6e
topology: v6e:2x2x1
jax: 0.10.0
libtpu: 0.0.40
codegen_flags: <defaults>
</compile_context>

<pallas_src>
import functools
import math

import jax
import jax.numpy as jnp
from jax.experimental import pallas as pl
from jax.experimental.pallas import tpu as pltpu

# --- "config.HIDDEN_LAYERS" equivalent (synthetic, deterministic) ------------
HIDDEN_LAYERS = [32, 32]

_LANE = 128      # vreg lane width: output/N block dims padded to this
_SUBLANE = 8     # f32 sublane width: batch block dim multiple
_MAX_TILE = 2048  # prefer grid=(1,) up to this many batch rows per step


def _round_up(n, m):
    return ((n + m - 1) // m) * m


def _cdiv(a, b):
    return -(-a // b)


def _pad_to(a, shape):
    """Zero-pad `a` up to `shape` (trailing padding only)."""
    return jnp.pad(a, [(0, s - d) for d, s in zip(a.shape, shape)])


def _make_mlp_kernel(num_layers: int, use_bf16: bool):
    """Fused MLP kernel. Ref order: (x, w0, b0, ..., w{L-1}, b{L-1}, out).

    ReLU after every layer except the last (matches the PyTorch nn.Sequential
    built in DQN.__init__).
    """

    def kernel(*refs):
        x_ref = refs[0]
        o_ref = refs[-1]
        param_refs = refs[1:-1]

        h = x_ref[...]                                     # f32 (batch_tile, K)
        for i in range(num_layers):
            w = param_refs[2 * i][...]                     # (K_i, N_i_padded)
            b = param_refs[2 * i + 1][...]                 # (1, N_i_padded)
            if use_bf16:
                y = jnp.dot(h.astype(jnp.bfloat16), w.astype(jnp.bfloat16),
                            preferred_element_type=jnp.float32)
            else:
                y = jnp.dot(h, w, preferred_element_type=jnp.float32)
            h = y + b
            if i < num_layers - 1:
                h = jnp.maximum(h, 0.0)                    # ReLU
        o_ref[...] = h.astype(o_ref.dtype)

    return kernel


def init_dqn_params(key, input_size, output_size, hidden_layers):
    """Deterministic init mimicking nn.Linear default (uniform +-1/sqrt(fan_in)).

    Returns a flat list [w0, b0, w1, b1, ...] with w_i of shape (in, out) and
    b_i of shape (1, out).
    """
    sizes = [input_size] + list(hidden_layers) + [output_size]
    params = []
    for i in range(len(sizes) - 1):
        fan_in, fan_out = sizes[i], sizes[i + 1]
        key, kw, kb = jax.random.split(key, 3)
        bound = 1.0 / math.sqrt(fan_in)
        params.append(jax.random.uniform(kw, (fan_in, fan_out), jnp.float32, -bound, bound))
        params.append(jax.random.uniform(kb, (1, fan_out), jnp.float32, -bound, bound))
    return params


def prepare_dqn_params(params):
    """One-time prep: pad hidden/output (N) dims to 128 lanes, leave the first
    layer's K dim (= input feature size) un-padded.

    Padded weight rows/columns and bias lanes are zero, so padded lanes stay
    exactly 0 through bias+ReLU -> bit-identical math after the final slice.

    Returns (padded_params, layer_sizes) where layer_sizes is the logical
    (in, h1, ..., out) tuple (static metadata for dqn_forward).
    """
    num_layers = len(params) // 2
    sizes = [params[0].shape[0]] + [params[2 * i].shape[1] for i in range(num_layers)]
    padded = [sizes[0]] + [_round_up(s, _LANE) for s in sizes[1:]]

    padded_params = []
    for i in range(num_layers):
        padded_params.append(_pad_to(params[2 * i], (padded[i], padded[i + 1])))
        padded_params.append(_pad_to(params[2 * i + 1], (1, padded[i + 1])))
    return padded_params, tuple(sizes)


@functools.partial(jax.jit, static_argnames=("layer_sizes", "batch_tile", "use_bf16"))
def dqn_forward(x, padded_params, layer_sizes, batch_tile=None, use_bf16=False):
    """Run the fused DQN MLP forward pass with a Pallas TPU kernel.

    x: (batch, input_size) float32.
    padded_params: output of prepare_dqn_params (padded once, reused every call).
    layer_sizes: static logical sizes (in, h1, ..., out).
    """
    batch, in_size = x.shape
    num_layers = len(padded_params) // 2
    assert layer_sizes[0] == in_size
    out_size = layer_sizes[-1]
    out_pad = padded_params[-2].shape[1]

    # --- balanced batch tiling ------------------------------------------------
    # grid=(1,) up to _MAX_TILE rows (kernel is per-step-overhead bound);
    # otherwise split into equal tiles so padding is < one sublane per step.
    if batch_tile is None:
        nsteps = _cdiv(batch, _MAX_TILE)
        batch_tile = _round_up(_cdiv(batch, nsteps), _SUBLANE)
    else:
        batch_tile = _round_up(batch_tile, _SUBLANE)
    nsteps = _cdiv(batch, batch_tile)
    padded_batch = nsteps * batch_tile

    x_p = x if padded_batch == batch else jnp.pad(x, ((0, padded_batch - batch), (0, 0)))
    grid = (nsteps,)

    # x is the only per-step DMA'd operand; its feature dim stays un-padded
    # (block last dim == full array dim, exempt from the 128 rule).
    # Weights/biases live whole in VMEM: single buffer, no per-step DMA.
    in_specs = [pl.BlockSpec((batch_tile, in_size), lambda i: (i, 0))]
    in_specs += [pl.BlockSpec(memory_space=pltpu.MemorySpace.VMEM)
                 for _ in padded_params]
    out_spec = pl.BlockSpec((batch_tile, out_pad), lambda i: (i, 0))

    # --- advisory cost estimate from LOGICAL (unpadded) shapes ----------------
    flops = 2 * batch * sum(layer_sizes[i] * layer_sizes[i + 1] for i in range(num_layers))
    bytes_accessed = 4 * (batch * in_size
                          + sum(layer_sizes[i] * layer_sizes[i + 1] + layer_sizes[i + 1]
                                for i in range(num_layers))
                          + batch * out_size)
    cost = pl.CostEstimate(flops=flops, transcendentals=0, bytes_accessed=bytes_accessed)

    # --- VMEM budget for whole-resident weights + double-buffered x/out tiles -
    param_bytes = sum(p.size * p.dtype.itemsize for p in padded_params)
    tile_bytes = 4 * batch_tile * (in_size + out_pad)
    vmem_needed = param_bytes + 2 * tile_bytes
    # TODO(synk): if vmem_needed approaches v7x's 64 MiB physical VMEM, fall
    # back to K-tiling the large weights via BlockSpec instead of whole-resident.
    cp_kwargs = {}
    if vmem_needed > (30 << 20):
        cp_kwargs["vmem_limit_bytes"] = min(int(vmem_needed * 1.25), 60 << 20)

    # NOTE: "parallel" vs "arbitrary" is measured-neutral on a single axis; on
    # v7x, pltpu.CORE_PARALLEL would shard the batch axis over both TCs, but at
    # this overhead-bound size a 2-way split is typically pure overhead.
    compiler_params = pltpu.CompilerParams(
        dimension_semantics=("parallel",), **cp_kwargs)

    out_padded = pl.pallas_call(
        _make_mlp_kernel(num_layers, use_bf16),
        out_shape=jax.ShapeDtypeStruct((padded_batch, out_pad), jnp.float32),
        grid_spec=pltpu.PrefetchScalarGridSpec(
            num_scalar_prefetch=0,
            grid=grid,
            in_specs=in_specs,
            out_specs=out_spec,
        ),
        compiler_params=compiler_params,
        cost_estimate=cost,
    )(x_p, *padded_params)

    # Slice off batch / lane padding (padded lanes are exactly zero).
    return out_padded[:batch, :out_size]


def dqn_forward_ref(x, params):
    """Pure-JAX reference for correctness checking (unpadded params)."""
    num_layers = len(params) // 2
    h = x
    for i in range(num_layers):
        h = h @ params[2 * i] + params[2 * i + 1]
        if i < num_layers - 1:
            h = jnp.maximum(h, 0.0)
    return h


if __name__ == "__main__":
    INPUT_SIZE = 16
    OUTPUT_SIZE = 4
    BATCH = 16

    key = jax.random.PRNGKey(0)
    key, kx = jax.random.split(key)
    x = jax.random.normal(kx, (BATCH, INPUT_SIZE), jnp.float32)
    params = init_dqn_params(key, INPUT_SIZE, OUTPUT_SIZE, HIDDEN_LAYERS)

    # One-time parameter prep (padding hoisted out of the per-call path).
    padded_params, layer_sizes = prepare_dqn_params(params)

    out = dqn_forward(x, padded_params, layer_sizes)
    out = jax.block_until_ready(out)

    ref = dqn_forward_ref(x, params)
    assert out.shape == (BATCH, OUTPUT_SIZE), out.shape
    assert jnp.allclose(out, ref, atol=1e-5, rtol=1e-5), "mismatch vs reference"

    print("KERNEL_OK")
</pallas_src>

<mosaic_0001>
module attributes {stable_mosaic.version = 11 : i64} {
  func.func @kernel(%arg0: i32, %arg1: memref<16x16xf32, #tpu.memory_space<vmem>>, %arg2: memref<16x128xf32, #tpu.memory_space<vmem>>, %arg3: memref<1x128xf32, #tpu.memory_space<vmem>>, %arg4: memref<128x128xf32, #tpu.memory_space<vmem>>, %arg5: memref<1x128xf32, #tpu.memory_space<vmem>>, %arg6: memref<128x128xf32, #tpu.memory_space<vmem>>, %arg7: memref<1x128xf32, #tpu.memory_space<vmem>>, %arg8: memref<16x128xf32, #tpu.memory_space<vmem>>) attributes {dimension_semantics = [#tpu.dimension_semantics<parallel>], iteration_bounds = array<i64: 1>, scalar_prefetch = 0 : i64, scratch_operands = 0 : i64, tpu.core_type = #tpu.core_type<tc>, window_params = [{transform_indices = @transform_0, window_bounds = array<i64: 16, 16>}, {pipeline_mode = #tpu.pipeline_mode<synchronous>, transform_indices = @transform_1, window_bounds = array<i64: 16, 128>}, {pipeline_mode = #tpu.pipeline_mode<synchronous>, transform_indices = @transform_2, window_bounds = array<i64: 1, 128>}, {pipeline_mode = #tpu.pipeline_mode<synchronous>, transform_indices = @transform_3, window_bounds = array<i64: 128, 128>}, {pipeline_mode = #tpu.pipeline_mode<synchronous>, transform_indices = @transform_4, window_bounds = array<i64: 1, 128>}, {pipeline_mode = #tpu.pipeline_mode<synchronous>, transform_indices = @transform_5, window_bounds = array<i64: 128, 128>}, {pipeline_mode = #tpu.pipeline_mode<synchronous>, transform_indices = @transform_6, window_bounds = array<i64: 1, 128>}, {transform_indices = @transform_7, window_bounds = array<i64: 16, 128>}]} {
    %c0 = arith.constant 0 : index
    %c0_0 = arith.constant 0 : index
    %0 = vector.load %arg1[%c0, %c0_0] : memref<16x16xf32, #tpu.memory_space<vmem>>, vector<16x16xf32>
    %c0_1 = arith.constant 0 : index
    %c0_2 = arith.constant 0 : index
    %1 = vector.load %arg2[%c0_1, %c0_2] : memref<16x128xf32, #tpu.memory_space<vmem>>, vector<16x128xf32>
    %c0_3 = arith.constant 0 : index
    %c0_4 = arith.constant 0 : index
    %2 = vector.load %arg3[%c0_3, %c0_4] : memref<1x128xf32, #tpu.memory_space<vmem>>, vector<1x128xf32>
    %cst = arith.constant dense<0.000000e+00> : vector<16x128xf32>
    %3 = tpu.matmul %0, %1, %cst {dimension_numbers = #tpu.dot_dimension_numbers<[1], [0], [0], [1], [0, 0, 1, 1], [], []>} : vector<16x16xf32>, vector<16x128xf32>, vector<16x128xf32> -> vector<16x128xf32>
    %4 = vector.broadcast %2 : vector<1x128xf32> to vector<16x128xf32>
    %5 = arith.addf %3, %4 : vector<16x128xf32>
    %cst_5 = arith.constant 0.000000e+00 : f32
    %6 = vector.broadcast %cst_5 : f32 to vector<16x128xf32>
    %7 = arith.maximumf %5, %6 : vector<16x128xf32>
    %c0_6 = arith.constant 0 : index
    %c0_7 = arith.constant 0 : index
    %8 = vector.load %arg4[%c0_6, %c0_7] : memref<128x128xf32, #tpu.memory_space<vmem>>, vector<128x128xf32>
    %c0_8 = arith.constant 0 : index
    %c0_9 = arith.constant 0 : index
    %9 = vector.load %arg5[%c0_8, %c0_9] : memref<1x128xf32, #tpu.memory_space<vmem>>, vector<1x128xf32>
    %cst_10 = arith.constant dense<0.000000e+00> : vector<16x128xf32>
    %10 = tpu.matmul %7, %8, %cst_10 {dimension_numbers = #tpu.dot_dimension_numbers<[1], [0], [0], [1], [0, 0, 1, 1], [], []>} : vector<16x128xf32>, vector<128x128xf32>, vector<16x128xf32> -> vector<16x128xf32>
    %11 = vector.broadcast %9 : vector<1x128xf32> to vector<16x128xf32>
    %12 = arith.addf %10, %11 : vector<16x128xf32>
    %cst_11 = arith.constant 0.000000e+00 : f32
    %13 = vector.broadcast %cst_11 : f32 to vector<16x128xf32>
    %14 = arith.maximumf %12, %13 : vector<16x128xf32>
    %c0_12 = arith.constant 0 : index
    %c0_13 = arith.constant 0 : index
    %15 = vector.load %arg6[%c0_12, %c0_13] : memref<128x128xf32, #tpu.memory_space<vmem>>, vector<128x128xf32>
    %c0_14 = arith.constant 0 : index
    %c0_15 = arith.constant 0 : index
    %16 = vector.load %arg7[%c0_14, %c0_15] : memref<1x128xf32, #tpu.memory_space<vmem>>, vector<1x128xf32>
    %cst_16 = arith.constant dense<0.000000e+00> : vector<16x128xf32>
    %17 = tpu.matmul %14, %15, %cst_16 {dimension_numbers = #tpu.dot_dimension_numbers<[1], [0], [0], [1], [0, 0, 1, 1], [], []>} : vector<16x128xf32>, vector<128x128xf32>, vector<16x128xf32> -> vector<16x128xf32>
    %18 = vector.broadcast %16 : vector<1x128xf32> to vector<16x128xf32>
    %19 = arith.addf %17, %18 : vector<16x128xf32>
    %c0_17 = arith.constant 0 : index
    %c0_18 = arith.constant 0 : index
    %20 = vector.load %arg8[%c0_17, %c0_18] : memref<16x128xf32, #tpu.memory_space<vmem>>, vector<16x128xf32>
    tpu.vector_store %arg8[%c0_17, %c0_18], %19 {strides = array<i32>} : memref<16x128xf32, #tpu.memory_space<vmem>>, vector<16x128xf32>,
    return
  }
  func.func @transform_0(%arg0: i32) -> (i32, i32) {
    %c0_i32 = arith.constant 0 : i32
    %c0_i32_0 = arith.constant 0 : i32
    return %arg0, %c0_i32 : i32, i32
  }
  func.func @transform_1(%arg0: i32) -> (i32, i32) {
    %c0_i32 = arith.constant 0 : i32
    %c0_i32_0 = arith.constant 0 : i32
    %c0_i32_1 = arith.constant 0 : i32
    return %c0_i32, %c0_i32_0 : i32, i32
  }
  func.func @transform_2(%arg0: i32) -> (i32, i32) {
    %c0_i32 = arith.constant 0 : i32
    %c0_i32_0 = arith.constant 0 : i32
    %c0_i32_1 = arith.constant 0 : i32
    return %c0_i32, %c0_i32_0 : i32, i32
  }
  func.func @transform_3(%arg0: i32) -> (i32, i32) {
    %c0_i32 = arith.constant 0 : i32
    %c0_i32_0 = arith.constant 0 : i32
    %c0_i32_1 = arith.constant 0 : i32
    return %c0_i32, %c0_i32_0 : i32, i32
  }
  func.func @transform_4(%arg0: i32) -> (i32, i32) {
    %c0_i32 = arith.constant 0 : i32
    %c0_i32_0 = arith.constant 0 : i32
    %c0_i32_1 = arith.constant 0 : i32
    return %c0_i32, %c0_i32_0 : i32, i32
  }
  func.func @transform_5(%arg0: i32) -> (i32, i32) {
    %c0_i32 = arith.constant 0 : i32
    %c0_i32_0 = arith.constant 0 : i32
    %c0_i32_1 = arith.constant 0 : i32
    return %c0_i32, %c0_i32_0 : i32, i32
  }
  func.func @transform_6(%arg0: i32) -> (i32, i32) {
    %c0_i32 = arith.constant 0 : i32
    %c0_i32_0 = arith.constant 0 : i32
    %c0_i32_1 = arith.constant 0 : i32
    return %c0_i32, %c0_i32_0 : i32, i32
  }
  func.func @transform_7(%arg0: i32) -> (i32, i32) {
    %c0_i32 = arith.constant 0 : i32
    %c0_i32_0 = arith.constant 0 : i32
    return %arg0, %c0_i32 : i32, i32
  }
}

</mosaic_0001>

<bundles_post_ra>
// kernel: dqn_forward.1
= control target key start
LH: loop header
LB: loop body
LE: loop exit
PB: predicated region body
PF: predicated region fallthrough
CT: control target
= control target key end

     0   :  { %12 = vsyncpa [#allocation3], 0  ;;  %s684_s0 = inlined_call_operand.hbm [shape: f32[16,16], index: 0, kind: input, shape index: {}]   ;;  %s685_s1 = inlined_call_operand.hbm [shape: f32[16,128], index: 1, kind: input, shape index: {}]   ;;  %s686_s2 = inlined_call_operand.vmem [shape: f32[1,128], index: 2, kind: input, shape index: {}]   ;;  %s687_s3 = inlined_call_operand.hbm [shape: f32[128,128], index: 3, kind: input, shape index: {}]   ;;  %s688_s4 = inlined_call_operand.vmem [shape: f32[1,128], index: 4, kind: input, shape index: {}]   ;;  %s689_s5 = inlined_call_operand.hbm [shape: f32[128,128], index: 5, kind: input, shape index: {}]   ;;  %s690_s6 = inlined_call_operand.vmem [shape: f32[1,128], index: 6, kind: input, shape index: {}]   ;;  %s691_s7 = inlined_call_operand.vmem [shape: f32[16,128], index: 7, kind: output, shape index: {}]  }
   0x1   :  { %13 = vsyncpa [#allocation5], 0 }
   0x2   :  { %14 = vsyncpa [#allocation8], 0  ;;  %s597_s24 = smov [#allocation4]   ;;  %s598_s26 = smov [#allocation2]  }
   0x3   :  { %s32_s25 = sshll.u32 %s597_s24, 4  ;;  %s20_s27 = sshll.u32 %s598_s26, 4  ;;  %s33_s25 = int_to_ptr.vmem [resolvable:$true] %s32_s25  ;;  %s21_s27 = int_to_ptr.vmem [resolvable:$true] %s20_s27 }
   0x4   :  { %s519_s28 = scalar_lea.vmem %s33_s25, 256  ;;  %p524_p1 = scmp.lt.s32.totalorder %s33_s25, %s33_s25 }
   0x5   :  { %p520_p0 = scmp.ne.s32.totalorder %s33_s25, %s519_s28  ;;  %p525_p2 = scmp.lt.s32.totalorder %s519_s28, %s519_s28 }
   0x7   :  { %p526_p3 = por %p525_p2, %p524_p1 }
   0x9   :  { %p527_p4 = pnand %p526_p3, %p520_p0 }
   0xb   :  { %530 = shalt.err (!%p527_p4)
}
   0xc   :  { %s599_s29 = smov 128   ;;  %s600_s30 = smov 8  }
   0xd   :  { %38 = dma.hbm_to_vmem [thread:$0]  %s685_s1, 256, %s33_s25, [#allocation5], %s599_s29, %s599_s29, %s600_s30  }
   0xe   :  { %s539_s10 = scalar_lea.vmem %s21_s27, 256  ;;  %p544_p6 = scmp.lt.s32.totalorder %s21_s27, %s21_s27 }
   0xf   :  { %p540_p5 = scmp.ne.s32.totalorder %s21_s27, %s539_s10  ;;  %p545_p7 = scmp.lt.s32.totalorder %s539_s10, %s539_s10 }
  0x11   :  { %p546_p8 = por %p545_p7, %p544_p6 }
  0x13   :  { %p547_p9 = pnand %p546_p8, %p540_p5 }
  0x15   :  { %550 = shalt.err (!%p547_p9)
}
  0x16   :  { %26 = dma.hbm_to_vmem [thread:$0]  %s684_s0, 256, %s21_s27, [#allocation3], %s599_s29, %s599_s29, %s600_s30  }
  0x17   :  { %s601_s13 = smov [#allocation6]   ;;  %s602_s15 = smov [#allocation7]  }
  0x18   :  { %s46_s14 = sshll.u32 %s601_s13, 4  ;;  %s60_s16 = sshll.u32 %s602_s15, 4  ;;  %s47_s14 = int_to_ptr.vmem [resolvable:$true] %s46_s14  ;;  %s61_s16 = int_to_ptr.vmem [resolvable:$true] %s60_s16 }
  0x19   :  { %s559_s1 = scalar_lea.vmem %s47_s14, 2048  ;;  %p564_p11 = scmp.lt.s32.totalorder %s47_s14, %s47_s14 }
  0x1a   :  { %p560_p10 = scmp.ne.s32.totalorder %s47_s14, %s559_s1  ;;  %p565_p12 = scmp.lt.s32.totalorder %s559_s1, %s559_s1 }
  0x1c   :  { %p566_p13 = por %p565_p12, %p564_p11 }
  0x1e   :  { %p567_p0 = pnand %p566_p13, %p560_p10 }
  0x20   :  { %570 = shalt.err (!%p567_p0)
}
  0x21   :  { %52 = dma.hbm_to_vmem [thread:$0]  %s687_s3, 2048, %s47_s14, [#allocation5], %s599_s29, %s599_s29, %s600_s30  }
  0x22   :  { %s579_s0 = scalar_lea.vmem %s61_s16, 2048  ;;  %p584_p2 = scmp.lt.s32.totalorder %s61_s16, %s61_s16 }
  0x23   :  { %p580_p1 = scmp.ne.s32.totalorder %s61_s16, %s579_s0  ;;  %p585_p3 = scmp.lt.s32.totalorder %s579_s0, %s579_s0 }
  0x25   :  { %p586_p4 = por %p585_p3, %p584_p2 }
  0x27   :  { %p587_p5 = pnand %p586_p4, %p580_p1 }
  0x29   :  { %590 = shalt.err (!%p587_p5)
}
  0x2a   :  { %66 = dma.hbm_to_vmem [thread:$0]  %s689_s5, 2048, %s61_s16, [#allocation8], %s599_s29, %s599_s29, %s600_s30  }
  0x2b   :  { %591 = dma.done.wait [#allocation3], 256  }
  0x2c   :  { %592 = vsyncadd [#allocation3], 4294967040 }
  0x2d   :  { %593 = dma.done.wait [#allocation5], 2304  }
  0x2e   :  { %594 = vsyncadd [#allocation5], 4294964992 }
  0x2f   :  { %595 = dma.done.wait [#allocation8], 2048  }
  0x30   :  { %596 = vsyncadd [#allocation8], 4294965248  ;;  %vm92_vm0 = vcmask 130048   ;;  %v84_v0 = vld [vmem:[#allocation4 + $0x8] sm:$0xff]  ;;  %v83_v1 = vld [vmem:[#allocation4] sm:$0xff] }
  0x31   :  { %v81_v2 = vld [vmem:[#allocation2] sm:$0xff]  ;;  %428 = vmatprep.subr.mxu0 %v84_v0  ;;  %v191_v3 = vld [vmem:[#allocation6 + $0x78] sm:$0xff]  ;;  %v190_v4 = vld [vmem:[#allocation6 + $0x70] sm:$0xff] }
  0x32   :  { %432 = vmatprep.mubr.msk.f32.mxu0 %vm92_vm0, %v81_v2  ;;  %429 = vmatpush3.msra.mxu0 %v84_v0  ;;  %v82_v5 = vld [vmem:[#allocation2 + $0x8] sm:$0xff]  ;;  %v188_v7 = vld [vmem:[#allocation6 + $0x60] sm:$0xff]  ;;  %v187_v8 = vld [vmem:[#allocation6 + $0x58] sm:$0xff] }
  0x33   :  { %435 = vmatprep.subr.mxu1 %v191_v3  ;;  %430 = vmatprep.subr.mxu0 %v83_v1  ;;  %v189_v6 = vld [vmem:[#allocation6 + $0x68] sm:$0xff]  ;;  %v186_v9 = vld [vmem:[#allocation6 + $0x50] sm:$0xff]  ;;  %v184_v11 = vld [vmem:[#allocation6 + $0x40] sm:$0xff] }
  0x34   :  { %436 = vmatpush3.msra.mxu1 %v191_v3  ;;  %431 = vmatpush3.msra.mxu0 %v83_v1  ;;  %v185_v10 = vld [vmem:[#allocation6 + $0x48] sm:$0xff]  ;;  %v183_v12 = vld [vmem:[#allocation6 + $0x38] sm:$0xff]  ;;  %v182_v13 = vld [vmem:[#allocation6 + $0x30] sm:$0xff] }
  0x35   :  { %437 = vmatprep.subr.mxu1 %v190_v4  ;;  %433 = vmatmul.mubr.msk.f32.vlgmr.msra.gmra.mxu0 %vm92_vm0, %v82_v5  ;;  %v181_v14 = vld [vmem:[#allocation6 + $0x28] sm:$0xff]  ;;  %v180_v15 = vld [vmem:[#allocation6 + $0x20] sm:$0xff]  ;;  %v179_v16 = vld [vmem:[#allocation6 + $0x18] sm:$0xff] }
  0x36   :  { %438 = vmatpush3.msra.mxu1 %v190_v4  ;;  %v178_v17 = vld [vmem:[#allocation6 + $0x10] sm:$0xff]  ;;  %v177_v18 = vld [vmem:[#allocation6 + $0x8] sm:$0xff]  ;;  %v176_v19 = vld [vmem:[#allocation6] sm:$0xff] }
  0x37   :  { %439 = vmatprep.subr.mxu1 %v189_v6  ;;  %v291_v20 = vld [vmem:[#allocation7 + $0x78] sm:$0xff]  ;;  %v290_v21 = vld [vmem:[#allocation7 + $0x70] sm:$0xff]  ;;  %v289_v22 = vld [vmem:[#allocation7 + $0x68] sm:$0xff] }
  0x38   :  { %440 = vmatpush3.msra.mxu1 %v189_v6  ;;  %470 = vmatprep.subr.mxu0 %v291_v20  ;;  %v288_v23 = vld [vmem:[#allocation7 + $0x60] sm:$0xff]  ;;  %v287_v24 = vld [vmem:[#allocation7 + $0x58] sm:$0xff]  ;;  %v286_v25 = vld [vmem:[#allocation7 + $0x50] sm:$0xff] }
  0x39   :  { %441 = vmatprep.subr.mxu1 %v188_v7  ;;  %471 = vmatpush3.msra.mxu0 %v291_v20  ;;  %v285_v26 = vld [vmem:[#allocation7 + $0x48] sm:$0xff]  ;;  %v284_v27 = vld [vmem:[#allocation7 + $0x40] sm:$0xff]  ;;  %v283_v28 = vld [vmem:[#allocation7 + $0x38] sm:$0xff] }
  0x3a   :  { %442 = vmatpush3.msra.mxu1 %v188_v7  ;;  %472 = vmatprep.subr.mxu0 %v290_v21  ;;  %v282_v29 = vld [vmem:[#allocation7 + $0x30] sm:$0xff]  ;;  %v281_v30 = vld [vmem:[#allocation7 + $0x28] sm:$0xff]  ;;  %v280_v31 = vld [vmem:[#allocation7 + $0x20] sm:$0xff] }
  0x3b   :  { %443 = vmatprep.subr.mxu1 %v187_v8  ;;  %473 = vmatpush3.msra.mxu0 %v290_v21  ;;  %v383_v32 = vld [vmem:[%s686_s2] ss:$0 sm:$0xff]  ;;  %v279_v39 = vld [vmem:[#allocation7 + $0x18] sm:$0xff]  ;;  %v278_v40 = vld [vmem:[#allocation7 + $0x10] sm:$0xff] }
  0x3c   :  { %444 = vmatpush3.msra.mxu1 %v187_v8  ;;  %474 = vmatprep.subr.mxu0 %v289_v22  ;;  %v277_v41 = vld [vmem:[#allocation7 + $0x8] sm:$0xff]  ;;  %v276_v42 = vld [vmem:[#allocation7] sm:$0xff] }
  0x3d   :  { %445 = vmatprep.subr.mxu1 %v186_v9  ;;  %475 = vmatpush3.msra.mxu0 %v289_v22  ;;  %v386_v43 = vld [vmem:[%s688_s4] ss:$0 sm:$0xff] }
  0x3e   :  { %446 = vmatpush3.msra.mxu1 %v186_v9  ;;  %476 = vmatprep.subr.mxu0 %v288_v23  ;;  %v387_v50 = vld [vmem:[%s690_s6] ss:$0 sm:$0xff] }
  0x3f   :  { %447 = vmatprep.subr.mxu1 %v185_v10  ;;  %477 = vmatpush3.msra.mxu0 %v288_v23 }
  0x40   :  { %448 = vmatpush3.msra.mxu1 %v185_v10  ;;  %478 = vmatprep.subr.mxu0 %v287_v24 }
  0x41   :  { %449 = vmatprep.subr.mxu1 %v184_v11  ;;  %479 = vmatpush3.msra.mxu0 %v287_v24 }
  0x42   :  { %450 = vmatpush3.msra.mxu1 %v184_v11  ;;  %480 = vmatprep.subr.mxu0 %v286_v25 }
  0x43   :  { %451 = vmatprep.subr.mxu1 %v183_v12  ;;  %481 = vmatpush3.msra.mxu0 %v286_v25 }
  0x44   :  { %452 = vmatpush3.msra.mxu1 %v183_v12  ;;  %482 = vmatprep.subr.mxu0 %v285_v26 }
  0x45   :  { %453 = vmatprep.subr.mxu1 %v182_v13  ;;  %483 = vmatpush3.msra.mxu0 %v285_v26 }
  0x46   :  { %454 = vmatpush3.msra.mxu1 %v182_v13  ;;  %484 = vmatprep.subr.mxu0 %v284_v27 }
  0x47   :  { %455 = vmatprep.subr.mxu1 %v181_v14  ;;  %485 = vmatpush3.msra.mxu0 %v284_v27 }
  0x48   :  { %456 = vmatpush3.msra.mxu1 %v181_v14  ;;  %486 = vmatprep.subr.mxu0 %v283_v28 }
  0x49   :  { %457 = vmatprep.subr.mxu1 %v180_v15  ;;  %487 = vmatpush3.msra.mxu0 %v283_v28 }
  0x4a   :  { %458 = vmatpush3.msra.mxu1 %v180_v15  ;;  %488 = vmatprep.subr.mxu0 %v282_v29 }
  0x4b   :  { %459 = vmatprep.subr.mxu1 %v179_v16  ;;  %489 = vmatpush3.msra.mxu0 %v282_v29 }
  0x4c   :  { %460 = vmatpush3.msra.mxu1 %v179_v16  ;;  %490 = vmatprep.subr.mxu0 %v281_v30 }
  0x4d   :  { %461 = vmatprep.subr.mxu1 %v178_v17  ;;  %491 = vmatpush3.msra.mxu0 %v281_v30 }
  0x4e   :  { %462 = vmatpush3.msra.mxu1 %v178_v17  ;;  %492 = vmatprep.subr.mxu0 %v280_v31 }
  0x4f   :  { %463 = vmatprep.subr.mxu1 %v177_v18  ;;  %493 = vmatpush3.msra.mxu0 %v280_v31 }
  0x50   :  { %464 = vmatpush3.msra.mxu1 %v177_v18  ;;  %494 = vmatprep.subr.mxu0 %v279_v39 }
  0x51   :  { %465 = vmatprep.subr.mxu1 %v176_v19  ;;  %495 = vmatpush3.msra.mxu0 %v279_v39 }
  0x52   :  { %466 = vmatpush3.msra.mxu1 %v176_v19  ;;  %496 = vmatprep.subr.mxu0 %v278_v40 }
  0x53   :  { %497 = vmatpush3.msra.mxu0 %v278_v40 }
  0x54   :  { %498 = vmatprep.subr.mxu0 %v277_v41 }
  0x55   :  { %499 = vmatpush3.msra.mxu0 %v277_v41 }
  0x56   :  { %500 = vmatprep.subr.mxu0 %v276_v42 }
  0x57   :  { %501 = vmatpush3.msra.mxu0 %v276_v42 }
  0xf5   :  { %v434_v33 = vpop.f32.mrf.mxu0 }
  0xf6   :  { %v171_v34 = vadd.f32 %v434_v33, %v383_v32 }
  0xf7   :  { %v165_v35 = vpop.f32.mrf.mxu0 }
  0xf8   :  { %v166_v36 = vadd.f32 %v383_v32, %v165_v35  ;;  %v175_v38 = vmax.f32 %v171_v34, 0.0 }
  0xfa   :  { %v174_v37 = vmax.f32 %v166_v36, 0.0 }
  0xfc   :  { %467 = vmatprep.mubr.f32.mxu1 %v174_v37 }
  0xfd   :  { %468 = vmatmul.mubr.f32.vlgmr.msra.gmra.mxu1 %v175_v38 }
 0x1bd   :  { %v469_v44 = vpop.f32.mrf.mxu1 }
 0x1be   :  { %v271_v45 = vadd.f32 %v469_v44, %v386_v43 }
 0x1bf   :  { %v265_v46 = vpop.f32.mrf.mxu1 }
 0x1c0   :  { %v266_v47 = vadd.f32 %v386_v43, %v265_v46  ;;  %v275_v49 = vmax.f32 %v271_v45, 0.0 }
 0x1c2   :  { %v274_v48 = vmax.f32 %v266_v47, 0.0 }
 0x1c4   :  { %502 = vmatprep.mubr.f32.mxu0 %v274_v48 }
 0x1c5   :  { %503 = vmatmul.mubr.f32.vlgmr.msra.gmra.mxu0 %v275_v49 }
 0x285   :  { %v504_v51 = vpop.f32.mrf.mxu0 }
 0x286   :  { %v371_v52 = vadd.f32 %v504_v51, %v387_v50 }
 0x287   :  { %v365_v53 = vpop.f32.mrf.mxu0 }
 0x288   :  { %375 = vst [vmem:[%s691_s7 + $0x8] sm:$0xff] %v371_v52  ;;  %v366_v54 = vadd.f32 %v387_v50, %v365_v53 }
 0x28a   :  { %374 = vst [vmem:[%s691_s7] sm:$0xff] %v366_v54 }
 0x28b   :  { %380 = vsyncpa [#allocation3], 1 }
 0x28c   :  { %381 = vsyncpa [#allocation5], 1 }
 0x28d   :  { %382 = vsyncpa [#allocation8], 1 }

</bundles_post_ra>
